<compile_context>
chip_gen: v6e
topology: v6e:2x2x1
jax: 0.10.0
libtpu: 0.0.40
codegen_flags: <defaults>
</compile_context>

<pallas_src>
import functools

import jax
import jax.numpy as jnp
from jax.experimental import pallas as pl
from jax.experimental.pallas import tpu as pltpu


def _tv1d_kernel(x_ref, out_ref, *, total_rows, block_rows):
    """One grid step: partial TV sum over a (block_rows, W) row tile.

    x_ref:   (block_rows, W) VMEM tile of the flattened (B*C, W) input.
    out_ref: (1, 1) SMEM slot, unique per grid step (no carried dependency).
    """
    i = pl.program_id(0)

    x = x_ref[...].astype(jnp.float32)          # (TR, W), f32 accumulate dtype
    diff = x[:, 1:] - x[:, :-1]                 # (TR, W-1)
    sq = diff * diff

    # If the last row-block is partial, its out-of-bounds rows hold
    # unspecified data -> mask them out. Trace-time branch: zero cost when
    # block_rows divides total_rows.
    if total_rows % block_rows != 0:
        row_ids = (
            jax.lax.broadcasted_iota(jnp.int32, sq.shape, 0) + i * block_rows
        )
        sq = jnp.where(row_ids < total_rows, sq, 0.0)

    out_ref[0, 0] = jnp.sum(sq)


def _pick_block_rows(num_rows, width, itemsize, target_bytes=4 * 1024 * 1024):
    """Largest row tile keeping one (double-buffered) input block ~target_bytes."""
    bytes_per_row = max(1, width * itemsize)
    tr = max(1, target_bytes // bytes_per_row)
    tr = min(tr, num_rows)
    if tr >= 8:
        tr = (tr // 8) * 8          # sublane-aligned block rows
    return tr


@functools.partial(jax.jit, static_argnames=("tv_weight", "count"))
def tv_loss_1d(x, tv_weight=1.0, count=1.0):
    """x: (B, C, W) array (any float dtype). Returns scalar TV loss (f32)."""
    B, C, W = x.shape
    if W < 2:
        return jnp.float32(0.0)

    R = B * C
    x2 = x.reshape(R, W)

    tr = _pick_block_rows(R, W, x2.dtype.itemsize)
    num_blocks = pl.cdiv(R, tr)

    # TODO(synk): for extremely large W (one row tile no longer fits VMEM),
    # additionally tile W in 128-multiple lane chunks with a boundary-column
    # correction pass.

    kernel = functools.partial(_tv1d_kernel, total_rows=R, block_rows=tr)

    partials = pl.pallas_call(
        kernel,
        out_shape=jax.ShapeDtypeStruct((num_blocks, 1), jnp.float32),
        grid_spec=pltpu.PrefetchScalarGridSpec(
            num_scalar_prefetch=0,
            grid=(num_blocks,),
            in_specs=[
                pl.BlockSpec((tr, W), lambda i: (i, 0)),
            ],
            out_specs=pl.BlockSpec(
                (1, 1), lambda i: (i, 0), memory_space=pltpu.SMEM
            ),
        ),
        compiler_params=pltpu.CompilerParams(
            # Each step writes its own partial -> fully parallel grid axis
            # (lets v7x shard row blocks across both TensorCores).
            dimension_semantics=("parallel",),
            # Explicit scoped-VMEM budget: 2 buffers x ~4 MiB tiles fit
            # comfortably on v5e / v6e / v7x.
            vmem_limit_bytes=32 * 1024 * 1024,
        ),
    )(x2)

    w_tv = jnp.sum(partials)
    return jnp.float32(tv_weight) * (w_tv / jnp.float32(count))


def tv_loss_1d_ref(x, tv_weight=1.0, count=1.0):
    """Pure-JAX reference mirroring the PyTorch forward."""
    xf = x.astype(jnp.float32)
    w_tv = jnp.sum(jnp.square(xf[:, :, 1:] - xf[:, :, :-1]))
    return tv_weight * (w_tv / count)


if __name__ == "__main__":
    key = jax.random.PRNGKey(0)
    tv_weight = 1.0
    count = 1.0

    # Case 1: small shape, evenly divided row blocks.
    B, C, W = 2, 4, 16
    x = jax.random.normal(key, (B, C, W), dtype=jnp.float32)
    out = jax.block_until_ready(tv_loss_1d(x, tv_weight=tv_weight, count=count))
    ref = tv_loss_1d_ref(x, tv_weight=tv_weight, count=count)
    assert jnp.allclose(out, ref, rtol=1e-5, atol=1e-5), (out, ref)

    # Case 2: ragged row count (B*C = 15) to exercise the partial-block mask.
    key2 = jax.random.PRNGKey(0)
    B2, C2, W2 = 3, 5, 16
    x2 = jax.random.normal(key2, (B2, C2, W2), dtype=jnp.float32)
    out2 = jax.block_until_ready(
        tv_loss_1d(x2, tv_weight=tv_weight, count=count)
    )
    ref2 = tv_loss_1d_ref(x2, tv_weight=tv_weight, count=count)
    assert jnp.allclose(out2, ref2, rtol=1e-5, atol=1e-5), (out2, ref2)

    print("KERNEL_OK")
</pallas_src>

<mosaic_0001>
module attributes {stable_mosaic.version = 11 : i64} {
  func.func @_tv1d_kernel(%arg0: i32, %arg1: memref<8x16xf32, #tpu.memory_space<vmem>>, %arg2: memref<1x1xf32, #tpu.memory_space<smem>>) attributes {dimension_semantics = [#tpu.dimension_semantics<parallel>], iteration_bounds = array<i64: 1>, scalar_prefetch = 0 : i64, scratch_operands = 0 : i64, tpu.core_type = #tpu.core_type<tc>, window_params = [{transform_indices = @transform_0, window_bounds = array<i64: 8, 16>}, {transform_indices = @transform_1, window_bounds = array<i64: 1, 1>}]} {
    %c0 = arith.constant 0 : index
    %c0_0 = arith.constant 0 : index
    %0 = vector.load %arg1[%c0, %c0_0] : memref<8x16xf32, #tpu.memory_space<vmem>>, vector<8x16xf32>
    %1 = vector.extract_strided_slice %0 {offsets = [0, 1], sizes = [8, 15], strides = [1, 1]} : vector<8x16xf32> to vector<8x15xf32>
    %2 = vector.extract_strided_slice %0 {offsets = [0, 0], sizes = [8, 15], strides = [1, 1]} : vector<8x16xf32> to vector<8x15xf32>
    %3 = arith.subf %1, %2 : vector<8x15xf32>
    %4 = arith.mulf %3, %3 : vector<8x15xf32>
    %5 = vector.shape_cast %4 : vector<8x15xf32> to vector<1x8x15xf32>
    %cst = arith.constant dense<0.000000e+00> : vector<1xf32>
    %6 = vector.multi_reduction <add>, %5, %cst [1, 2] : vector<1x8x15xf32> to vector<1xf32>
    %7 = vector.shape_cast %6 : vector<1xf32> to vector<1x1x1xf32>
    %8 = vector.extract %7[0, 0, 0] : f32 from vector<1x1x1xf32>
    %c0_1 = arith.constant 0 : index
    %c0_2 = arith.constant 0 : index
    %9 = memref.load %arg2[%c0_1, %c0_2] : memref<1x1xf32, #tpu.memory_space<smem>>
    memref.store %8, %arg2[%c0_1, %c0_2] : memref<1x1xf32, #tpu.memory_space<smem>>
    return
  }
  func.func @transform_0(%arg0: i32) -> (i32, i32) {
    %c0_i32 = arith.constant 0 : i32
    %c0_i32_0 = arith.constant 0 : i32
    return %arg0, %c0_i32 : i32, i32
  }
  func.func @transform_1(%arg0: i32) -> (i32, i32) {
    %c0_i32 = arith.constant 0 : i32
    %c0_i32_0 = arith.constant 0 : i32
    return %arg0, %c0_i32 : i32, i32
  }
}

</mosaic_0001>

<bundles_post_ra>
// kernel: tv_loss_1d.1
= control target key start
LH: loop header
LB: loop body
LE: loop exit
PB: predicated region body
PF: predicated region fallthrough
CT: control target
= control target key end

     0   :  { %6 = vsyncpa [#allocation3], 0  ;;  %s117_s0 = inlined_call_operand.hbm [shape: f32[8,16], index: 0, kind: input, shape index: {}]   ;;  %s118_s1 = inlined_call_operand.hbm [shape: f32[1,1], index: 1, kind: output, shape index: {}]  }
   0x1   :  { %7 = vsyncpa [#allocation4], 0  ;;  %s97_s6 = smov [#allocation2]  }
   0x2   :  { %s14_s7 = sshll.u32 %s97_s6, 4  ;;  %s15_s7 = int_to_ptr.vmem [resolvable:$true] %s14_s7 }
   0x3   :  { %s73_s8 = scalar_lea.vmem %s15_s7, 128  ;;  %p78_p1 = scmp.lt.s32.totalorder %s15_s7, %s15_s7 }
   0x4   :  { %p74_p0 = scmp.ne.s32.totalorder %s15_s7, %s73_s8  ;;  %p79_p2 = scmp.lt.s32.totalorder %s73_s8, %s73_s8 }
   0x6   :  { %p80_p3 = por %p79_p2, %p78_p1 }
   0x8   :  { %p81_p4 = pnand %p80_p3, %p74_p0 }
   0xa   :  { %84 = shalt.err (!%p81_p4)
}
   0xb   :  { %17 = dma.hbm_to_vmem [thread:$0]  %s117_s0, 128, %s15_s7, [#allocation3]  }
   0xc   :  { %93 = dma.done.wait [#allocation3], 128  }
   0xd   :  { %94 = vsyncadd [#allocation3], 4294967168  ;;  %v21_v0 = vld [vmem:[#allocation2] sm:$0xff]  ;;  %s98_s11 = smov 1   ;;  %s99_s12 = smov 127   ;;  %vm32_vm0 = vcmask 121856  }
   0xe   :  { %23 = vrot.lane.b32.xlu0 %v21_v0, %s98_s11  ;;  %s100_s13 = smov [#allocation5]  }
  0x80   :  { %v24_v1 = vpop.permute.xlu0 %23 }
  0x81   :  { %v26_v2 = vsub.f32 %v21_v0, %v24_v1 }
  0x83   :  { %v27_v3 = vmul.f32 %v26_v2, %v26_v2 }
  0x85   :  { %29 = vrot.lane.b32.xlu0 %v27_v3, %s99_s12 }
  0xf7   :  { %v30_v4 = vpop.permute.xlu0 %29 }
  0xf8   :  { %v33_v5 = vsel %vm32_vm0, %v30_v4, 0.0 }
  0xf9   :  { %34 = vadd.xlane.f32.xlu1 %v33_v5 }
 0x182   :  { %v35_v6 = vpop.xlane.xlu1 %34 }
 0x183   :  { %v36_v7 = vrot.slane %v35_v6, 4 }
 0x185   :  { %v37_v8 = vadd.f32 %v36_v7, %v35_v6 }
 0x187   :  { %v38_v9 = vrot.slane %v37_v8, 2 }
 0x189   :  { %v39_v10 = vadd.f32 %v38_v9, %v37_v8 }
 0x18b   :  { %v40_v11 = vrot.slane %v39_v10, 1 }
 0x18d   :  { %v41_v12 = vadd.f32 %v40_v11, %v39_v10 }
 0x18f   :  { %59 = vpush %v41_v12 }
 0x1c0   :  { %s60_s0 = spop %59 }
 0x1c1   :  { %44 = sst [smem:[#allocation5]] %s60_s0 }
 0x1c2   :  { %52 = dma.smem_to_hbm %s100_s13, 16, %s118_s1, [#allocation4]  }
 0x1c3   :  { %95 = dma.done.wait [#allocation4], 16  }
 0x1c4   :  { %96 = vsyncadd [#allocation4], 4294967280 }
 0x1c5   :  { %56 = sfence }
 0x1c6   :  { %57 = vsyncpa [#allocation3], 1 }
 0x1c7   :  { %58 = vsyncpa [#allocation4], 1 }

</bundles_post_ra>
